<compile_context>
chip_gen: v7x
topology: tpu7x:2x2x1
jax: 0.10.0
libtpu: 0.0.40
codegen_flags: <defaults>
</compile_context>

<pallas_src>
import functools

import jax
import jax.numpy as jnp
from jax.experimental import pallas as pl
from jax.experimental.pallas import tpu as pltpu


def attention_head_kernel(x_ref, wt_ref, bw_ref, v_ref, bv_ref, out_ref, *,
                          approx_recip, lane_pack):
    # x_ref:  (TB, S, D)   TB batch rows
    # wt_ref: (D, H)       W.weight transposed, in the MXU dtype (bf16/f32)
    # bw_ref: (1, H)       W.bias (f32)
    # v_ref:  (1, H)       V.weight (out_features == 1), f32
    # bv_ref: (1,)         V.bias, SMEM scalar
    # out_ref: (TB, D)                 when lane_pack == False
    #          (1, 1, TB*D)            when lane_pack == True (lane-dense row)
    TB, S, D = x_ref.shape
    H = wt_ref.shape[1]

    # Hidden projection on the MXU: (TB*S, D) @ (D, H), bf16 operands with f32
    # accumulation; tanh on the EUP.  NOTE: S is assumed to be a multiple of 8
    # so the leading-dim collapse does not cross (8,128) tile boundaries.
    x2 = x_ref[...].reshape(TB * S, D).astype(wt_ref.dtype)
    h = jnp.tanh(
        jnp.dot(x2, wt_ref[...], preferred_element_type=jnp.float32)
        + bw_ref[...]
    )                                                       # (TB*S, H) f32

    # One logit per position: lane reduce over (small) H, scalar bias from SMEM.
    scores = jnp.sum(h.reshape(TB, S, H) * v_ref[...], axis=-1) + bv_ref[0]  # (TB, S)

    # Softmax over the sequence axis (torch dim=1).  Divide goes to the EUP.
    scores = scores - jnp.max(scores, axis=-1, keepdims=True)
    e = jnp.exp(scores)
    attn = e * pl.reciprocal(jnp.sum(e, axis=-1, keepdims=True),
                             approx=approx_recip)           # (TB, S)

    # Weighted sum over S on the VPU (multiply) + XLU (sublane reduce).  This
    # avoids TB separate M=1 MXU matmuls (~1/256 row utilization).  x is
    # re-read from the ref here to bound the live range of the big tile.
    # (For very large TB*S a block-diagonal (TB, TB*S) @ (TB*S, D) single MXU
    # pass would be the alternative.)
    ctx = jnp.sum(attn[:, :, None] * x_ref[...].astype(jnp.float32), axis=1)  # (TB, D)

    if lane_pack:
        # Lane-dense output: pack the TB rows of D features into one
        # (1, TB*D) row so the writeback DMA is dense instead of a narrow
        # (TB, D<128) masked store.
        for b in range(TB):  # TB is small/static
            out_ref[:, :, pl.ds(b * D, D)] = (
                ctx[b:b + 1, :].astype(out_ref.dtype)[None, :, :]
            )
    else:
        out_ref[...] = ctx.astype(out_ref.dtype)


def _vmem_budget_and_limit():
    """Generation-aware VMEM numbers: (tile-chooser budget, vmem_limit_bytes)."""
    cap = 64 * 1024 * 1024  # conservative fallback (v7x physical VMEM)
    try:
        info = pltpu.get_tpu_info()
        cap = int(getattr(info, "vmem_capacity_bytes", cap) or cap)
    except Exception:
        pass
    limit = min(cap * 3 // 4, 64 * 1024 * 1024)   # 48 MiB on v7x, 64 MiB on v5e/v6e
    budget = limit * 3 // 5                       # headroom for compiler temps
    return budget, limit


def _choose_batch_tile(B, S, D, H, x_itemsize, mxu_itemsize, vmem_budget_bytes,
                       *, target_rows=512):
    """Largest useful, sublane-legal TB (multiple of 8 or == B) that divides B
    and fits the VMEM budget.  Prefers the smallest tile that already gives
    `target_rows` MXU rows per step; otherwise the largest feasible tile
    (fewest grid steps — extra steps are pure overhead on 1-TC chips)."""

    def fits(t):
        rows = t * S
        blocks = 2 * (t * S * D * x_itemsize              # x block (double buffered)
                      + t * D * x_itemsize                 # out block
                      + D * H * mxu_itemsize + 2 * H * 4)  # wt / bw / v blocks
        inter = (rows * D * mxu_itemsize   # x2 cast fed to the MXU
                 + rows * H * 4            # tanh(h) f32
                 + 2 * rows * 4            # scores / attn
                 + rows * D * 4            # attn * x product
                 + t * D * 4)              # ctx
        return blocks + 2 * inter <= vmem_budget_bytes  # 2x slack

    # Sublane-legal candidates only.
    aligned = [t for t in range(8, B + 1, 8) if B % t == 0]
    if B not in aligned:
        aligned.append(B)              # full-dim block is always layout-legal
    feasible = [t for t in sorted(aligned) if fits(t)]
    if not feasible:
        # Fall back to any fitting divisor (may force masked sublane stores).
        feasible = [t for t in range(1, B + 1) if B % t == 0 and fits(t)] or [1]

    for t in feasible:
        if t * S >= target_rows:
            return t
    return feasible[-1]


def attention_head(x, w_weight, w_bias, v_weight, v_bias, *, batch_tile=None,
                   mxu_dtype=jnp.bfloat16, approx_reciprocal=True):
    """x: [B, S, D]; w_weight: [H, D]; w_bias: [H]; v_weight: [1, H]; v_bias: [1]."""
    B, S, D = x.shape
    H = w_weight.shape[0]

    budget, vmem_limit = _vmem_budget_and_limit()
    mxu_itemsize = jnp.dtype(mxu_dtype).itemsize

    if batch_tile is None:
        batch_tile = _choose_batch_tile(B, S, D, H, x.dtype.itemsize,
                                        mxu_itemsize, budget)
    TB = batch_tile
    assert B % TB == 0, (B, TB)
    G = B // TB

    wt = jnp.transpose(w_weight).astype(mxu_dtype)    # (D, H), MXU operand dtype
    bw = w_bias.reshape(1, H).astype(jnp.float32)     # (1, H)
    v = v_weight.reshape(1, H).astype(jnp.float32)    # (1, H)
    bv = v_bias.reshape(1).astype(jnp.float32)        # (1,) -> SMEM scalar

    lane_pack = (D % 128 != 0)   # D < 128 here -> pack TB rows into one lane-dense row

    kernel = functools.partial(attention_head_kernel,
                               approx_recip=approx_reciprocal,
                               lane_pack=lane_pack)

    if lane_pack:
        out_shape = jax.ShapeDtypeStruct((G, 1, TB * D), x.dtype)
        out_spec = pl.BlockSpec((1, 1, TB * D), lambda g: (g, 0, 0))
    else:
        out_shape = jax.ShapeDtypeStruct((B, D), x.dtype)
        out_spec = pl.BlockSpec((TB, D), lambda g: (g, 0))

    cost = pl.CostEstimate(
        flops=2 * B * S * D * H + 2 * B * S * H + 2 * B * S * D,
        transcendentals=B * S * (H + 1),
        bytes_accessed=(B * S * D + B * D) * x.dtype.itemsize
                       + D * H * mxu_itemsize + 2 * H * 4,
    )

    out = pl.pallas_call(
        kernel,
        out_shape=out_shape,
        grid_spec=pltpu.PrefetchScalarGridSpec(
            num_scalar_prefetch=0,
            grid=(G,),
            in_specs=[
                pl.BlockSpec((TB, S, D), lambda g: (g, 0, 0)),      # x: TB batch rows
                pl.BlockSpec((D, H), lambda g: (0, 0)),             # wt (replicated)
                pl.BlockSpec((1, H), lambda g: (0, 0)),             # bw
                pl.BlockSpec((1, H), lambda g: (0, 0)),             # v
                pl.BlockSpec(memory_space=pltpu.MemorySpace.SMEM),  # bv scalar
            ],
            out_specs=out_spec,
        ),
        compiler_params=pltpu.CompilerParams(
            dimension_semantics=("parallel",),
            vmem_limit_bytes=vmem_limit,
        ),
        cost_estimate=cost,
    )(x, wt, bw, v, bv)

    if lane_pack:
        out = out.reshape(B, D)
    return out


def attention_head_ref(x, w_weight, w_bias, v_weight, v_bias):
    """Plain-JAX reference mirroring the PyTorch forward."""
    h = jnp.tanh(jnp.einsum("bsd,hd->bsh", x, w_weight) + w_bias)
    scores = jnp.einsum("bsh,oh->bso", h, v_weight) + v_bias       # (B, S, 1)
    attn = jax.nn.softmax(scores, axis=1)
    return jnp.sum(attn * x, axis=1)                               # (B, D)


if __name__ == "__main__":
    # Small shapes consistent with the module: input_dim=32, head_hidden_dim=32.
    B, S, D, H = 8, 16, 32, 32

    key = jax.random.PRNGKey(0)
    kx, kw, kbw, kv, kbv = jax.random.split(key, 5)

    x = jax.random.normal(kx, (B, S, D), dtype=jnp.float32)
    # Deterministic synthetic parameters (nn.Linear-shaped).
    w_weight = jax.random.normal(kw, (H, D), dtype=jnp.float32) * 0.1
    w_bias = jax.random.normal(kbw, (H,), dtype=jnp.float32) * 0.1
    v_weight = jax.random.normal(kv, (1, H), dtype=jnp.float32) * 0.1
    v_bias = jax.random.normal(kbv, (1,), dtype=jnp.float32) * 0.1

    ref = attention_head_ref(x, w_weight, w_bias, v_weight, v_bias)

    # Exact path: f32 MXU operands + exact reciprocal -> tight tolerance.
    out_exact = jax.block_until_ready(
        attention_head(x, w_weight, w_bias, v_weight, v_bias,
                       mxu_dtype=jnp.float32, approx_reciprocal=False))
    assert out_exact.shape == (B, D)
    assert jnp.allclose(out_exact, ref, atol=1e-5, rtol=1e-5), (out_exact, ref)

    # Fast (default) path: bf16 MXU operands + approx EUP reciprocal.
    out_fast = jax.block_until_ready(
        attention_head(x, w_weight, w_bias, v_weight, v_bias))
    assert out_fast.shape == (B, D)
    assert jnp.allclose(out_fast, ref, atol=2e-2, rtol=2e-2), (out_fast, ref)

    print("KERNEL_OK")
</pallas_src>

<mosaic_0001>
module attributes {stable_mosaic.version = 11 : i64} {
  func.func @attention_head_kernel(%arg0: i32, %arg1: memref<8x16x32xf32, #tpu.memory_space<vmem>>, %arg2: memref<32x32xf32, #tpu.memory_space<vmem>>, %arg3: memref<1x32xf32, #tpu.memory_space<vmem>>, %arg4: memref<1x32xf32, #tpu.memory_space<vmem>>, %arg5: memref<1xf32, #tpu.memory_space<smem>>, %arg6: memref<1x1x256xf32, #tpu.memory_space<vmem>>) attributes {dimension_semantics = [#tpu.dimension_semantics<parallel>], iteration_bounds = array<i64: 1>, scalar_prefetch = 0 : i64, scratch_operands = 0 : i64, tpu.core_type = #tpu.core_type<tc>, window_params = [{transform_indices = @transform_0, window_bounds = array<i64: 8, 16, 32>}, {pipeline_mode = #tpu.pipeline_mode<synchronous>, transform_indices = @transform_1, window_bounds = array<i64: 32, 32>}, {pipeline_mode = #tpu.pipeline_mode<synchronous>, transform_indices = @transform_2, window_bounds = array<i64: 1, 32>}, {pipeline_mode = #tpu.pipeline_mode<synchronous>, transform_indices = @transform_3, window_bounds = array<i64: 1, 32>}, {transform_indices = @transform_4, window_bounds = array<i64: 1>}, {transform_indices = @transform_5, window_bounds = array<i64: 1, 1, 256>}]} {
    %c0 = arith.constant 0 : index
    %c0_0 = arith.constant 0 : index
    %c0_1 = arith.constant 0 : index
    %0 = vector.load %arg1[%c0, %c0_0, %c0_1] : memref<8x16x32xf32, #tpu.memory_space<vmem>>, vector<8x16x32xf32>
    %1 = vector.shape_cast %0 : vector<8x16x32xf32> to vector<128x32xf32>
    %c0_2 = arith.constant 0 : index
    %c0_3 = arith.constant 0 : index
    %2 = vector.load %arg2[%c0_2, %c0_3] : memref<32x32xf32, #tpu.memory_space<vmem>>, vector<32x32xf32>
    %cst = arith.constant dense<0.000000e+00> : vector<128x32xf32>
    %3 = tpu.matmul %1, %2, %cst {dimension_numbers = #tpu.dot_dimension_numbers<[1], [0], [0], [1], [0, 0, 1, 1], [], []>} : vector<128x32xf32>, vector<32x32xf32>, vector<128x32xf32> -> vector<128x32xf32>
    %c0_4 = arith.constant 0 : index
    %c0_5 = arith.constant 0 : index
    %4 = vector.load %arg3[%c0_4, %c0_5] : memref<1x32xf32, #tpu.memory_space<vmem>>, vector<1x32xf32>
    %5 = vector.broadcast %4 : vector<1x32xf32> to vector<128x32xf32>
    %6 = arith.addf %3, %5 : vector<128x32xf32>
    %7 = math.tanh %6 : vector<128x32xf32>
    %8 = vector.shape_cast %7 : vector<128x32xf32> to vector<8x16x32xf32>
    %c0_6 = arith.constant 0 : index
    %c0_7 = arith.constant 0 : index
    %9 = vector.load %arg4[%c0_6, %c0_7] : memref<1x32xf32, #tpu.memory_space<vmem>>, vector<1x32xf32>
    %10 = vector.shape_cast %9 : vector<1x32xf32> to vector<1x1x32xf32>
    %11 = vector.broadcast %10 : vector<1x1x32xf32> to vector<8x16x32xf32>
    %12 = arith.mulf %8, %11 : vector<8x16x32xf32>
    %cst_8 = arith.constant dense<0.000000e+00> : vector<8x16xf32>
    %13 = vector.multi_reduction <add>, %12, %cst_8 [2] : vector<8x16x32xf32> to vector<8x16xf32>
    %c0_9 = arith.constant 0 : index
    %14 = memref.load %arg5[%c0_9] : memref<1xf32, #tpu.memory_space<smem>>
    %15 = vector.broadcast %14 : f32 to vector<8x16xf32>
    %16 = arith.addf %13, %15 : vector<8x16xf32>
    %cst_10 = arith.constant dense<0xFF800000> : vector<8xf32>
    %17 = vector.multi_reduction <maximumf>, %16, %cst_10 [1] : vector<8x16xf32> to vector<8xf32>
    %18 = vector.shape_cast %17 : vector<8xf32> to vector<8x1xf32>
    %19 = vector.broadcast %18 : vector<8x1xf32> to vector<8x16xf32>
    %20 = arith.subf %16, %19 : vector<8x16xf32>
    %21 = math.exp %20 : vector<8x16xf32>
    %cst_11 = arith.constant dense<0.000000e+00> : vector<8xf32>
    %22 = vector.multi_reduction <add>, %21, %cst_11 [1] : vector<8x16xf32> to vector<8xf32>
    %23 = vector.shape_cast %22 : vector<8xf32> to vector<8x1xf32>
    %24 = tpu.reciprocal %23 : vector<8x1xf32> -> vector<8x1xf32>
    %25 = vector.broadcast %24 : vector<8x1xf32> to vector<8x16xf32>
    %26 = arith.mulf %21, %25 : vector<8x16xf32>
    %27 = vector.shape_cast %26 : vector<8x16xf32> to vector<8x16x1xf32>
    %c0_12 = arith.constant 0 : index
    %c0_13 = arith.constant 0 : index
    %c0_14 = arith.constant 0 : index
    %28 = vector.load %arg1[%c0_12, %c0_13, %c0_14] : memref<8x16x32xf32, #tpu.memory_space<vmem>>, vector<8x16x32xf32>
    %29 = vector.broadcast %27 : vector<8x16x1xf32> to vector<8x16x32xf32>
    %30 = arith.mulf %29, %28 : vector<8x16x32xf32>
    %cst_15 = arith.constant dense<0.000000e+00> : vector<8x32xf32>
    %31 = vector.multi_reduction <add>, %30, %cst_15 [1] : vector<8x16x32xf32> to vector<8x32xf32>
    %32 = vector.extract_strided_slice %31 {offsets = [0, 0], sizes = [1, 32], strides = [1, 1]} : vector<8x32xf32> to vector<1x32xf32>
    %33 = vector.shape_cast %32 : vector<1x32xf32> to vector<1x1x32xf32>
    %c0_16 = arith.constant 0 : index
    %c0_17 = arith.constant 0 : index
    %c0_18 = arith.constant 0 : index
    %34 = vector.load %arg6[%c0_16, %c0_17, %c0_18] : memref<1x1x256xf32, #tpu.memory_space<vmem>>, vector<1x1x32xf32>
    tpu.vector_store %arg6[%c0_16, %c0_17, %c0_18], %33 {strides = array<i32>} : memref<1x1x256xf32, #tpu.memory_space<vmem>>, vector<1x1x32xf32>,
    %35 = vector.extract_strided_slice %31 {offsets = [1, 0], sizes = [1, 32], strides = [1, 1]} : vector<8x32xf32> to vector<1x32xf32>
    %36 = vector.shape_cast %35 : vector<1x32xf32> to vector<1x1x32xf32>
    %c0_19 = arith.constant 0 : index
    %c0_20 = arith.constant 0 : index
    %c32 = arith.constant 32 : index
    %37 = vector.load %arg6[%c0_19, %c0_20, %c32] : memref<1x1x256xf32, #tpu.memory_space<vmem>>, vector<1x1x32xf32>
    tpu.vector_store %arg6[%c0_19, %c0_20, %c32], %36 {strides = array<i32>} : memref<1x1x256xf32, #tpu.memory_space<vmem>>, vector<1x1x32xf32>,
    %38 = vector.extract_strided_slice %31 {offsets = [2, 0], sizes = [1, 32], strides = [1, 1]} : vector<8x32xf32> to vector<1x32xf32>
    %39 = vector.shape_cast %38 : vector<1x32xf32> to vector<1x1x32xf32>
    %c0_21 = arith.constant 0 : index
    %c0_22 = arith.constant 0 : index
    %c64 = arith.constant 64 : index
    %40 = vector.load %arg6[%c0_21, %c0_22, %c64] : memref<1x1x256xf32, #tpu.memory_space<vmem>>, vector<1x1x32xf32>
    tpu.vector_store %arg6[%c0_21, %c0_22, %c64], %39 {strides = array<i32>} : memref<1x1x256xf32, #tpu.memory_space<vmem>>, vector<1x1x32xf32>,
    %41 = vector.extract_strided_slice %31 {offsets = [3, 0], sizes = [1, 32], strides = [1, 1]} : vector<8x32xf32> to vector<1x32xf32>
    %42 = vector.shape_cast %41 : vector<1x32xf32> to vector<1x1x32xf32>
    %c0_23 = arith.constant 0 : index
    %c0_24 = arith.constant 0 : index
    %c96 = arith.constant 96 : index
    %43 = vector.load %arg6[%c0_23, %c0_24, %c96] : memref<1x1x256xf32, #tpu.memory_space<vmem>>, vector<1x1x32xf32>
    tpu.vector_store %arg6[%c0_23, %c0_24, %c96], %42 {strides = array<i32>} : memref<1x1x256xf32, #tpu.memory_space<vmem>>, vector<1x1x32xf32>,
    %44 = vector.extract_strided_slice %31 {offsets = [4, 0], sizes = [1, 32], strides = [1, 1]} : vector<8x32xf32> to vector<1x32xf32>
    %45 = vector.shape_cast %44 : vector<1x32xf32> to vector<1x1x32xf32>
    %c0_25 = arith.constant 0 : index
    %c0_26 = arith.constant 0 : index
    %c128 = arith.constant 128 : index
    %46 = vector.load %arg6[%c0_25, %c0_26, %c128] : memref<1x1x256xf32, #tpu.memory_space<vmem>>, vector<1x1x32xf32>
    tpu.vector_store %arg6[%c0_25, %c0_26, %c128], %45 {strides = array<i32>} : memref<1x1x256xf32, #tpu.memory_space<vmem>>, vector<1x1x32xf32>,
    %47 = vector.extract_strided_slice %31 {offsets = [5, 0], sizes = [1, 32], strides = [1, 1]} : vector<8x32xf32> to vector<1x32xf32>
    %48 = vector.shape_cast %47 : vector<1x32xf32> to vector<1x1x32xf32>
    %c0_27 = arith.constant 0 : index
    %c0_28 = arith.constant 0 : index
    %c160 = arith.constant 160 : index
    %49 = vector.load %arg6[%c0_27, %c0_28, %c160] : memref<1x1x256xf32, #tpu.memory_space<vmem>>, vector<1x1x32xf32>
    tpu.vector_store %arg6[%c0_27, %c0_28, %c160], %48 {strides = array<i32>} : memref<1x1x256xf32, #tpu.memory_space<vmem>>, vector<1x1x32xf32>,
    %50 = vector.extract_strided_slice %31 {offsets = [6, 0], sizes = [1, 32], strides = [1, 1]} : vector<8x32xf32> to vector<1x32xf32>
    %51 = vector.shape_cast %50 : vector<1x32xf32> to vector<1x1x32xf32>
    %c0_29 = arith.constant 0 : index
    %c0_30 = arith.constant 0 : index
    %c192 = arith.constant 192 : index
    %52 = vector.load %arg6[%c0_29, %c0_30, %c192] : memref<1x1x256xf32, #tpu.memory_space<vmem>>, vector<1x1x32xf32>
    tpu.vector_store %arg6[%c0_29, %c0_30, %c192], %51 {strides = array<i32>} : memref<1x1x256xf32, #tpu.memory_space<vmem>>, vector<1x1x32xf32>,
    %53 = vector.extract_strided_slice %31 {offsets = [7, 0], sizes = [1, 32], strides = [1, 1]} : vector<8x32xf32> to vector<1x32xf32>
    %54 = vector.shape_cast %53 : vector<1x32xf32> to vector<1x1x32xf32>
    %c0_31 = arith.constant 0 : index
    %c0_32 = arith.constant 0 : index
    %c224 = arith.constant 224 : index
    %55 = vector.load %arg6[%c0_31, %c0_32, %c224] : memref<1x1x256xf32, #tpu.memory_space<vmem>>, vector<1x1x32xf32>
    tpu.vector_store %arg6[%c0_31, %c0_32, %c224], %54 {strides = array<i32>} : memref<1x1x256xf32, #tpu.memory_space<vmem>>, vector<1x1x32xf32>,
    return
  }
  func.func @transform_0(%arg0: i32) -> (i32, i32, i32) {
    %c0_i32 = arith.constant 0 : i32
    %c0_i32_0 = arith.constant 0 : i32
    %c0_i32_1 = arith.constant 0 : i32
    return %arg0, %c0_i32, %c0_i32_0 : i32, i32, i32
  }
  func.func @transform_1(%arg0: i32) -> (i32, i32) {
    %c0_i32 = arith.constant 0 : i32
    %c0_i32_0 = arith.constant 0 : i32
    %c0_i32_1 = arith.constant 0 : i32
    return %c0_i32, %c0_i32_0 : i32, i32
  }
  func.func @transform_2(%arg0: i32) -> (i32, i32) {
    %c0_i32 = arith.constant 0 : i32
    %c0_i32_0 = arith.constant 0 : i32
    %c0_i32_1 = arith.constant 0 : i32
    return %c0_i32, %c0_i32_0 : i32, i32
  }
  func.func @transform_3(%arg0: i32) -> (i32, i32) {
    %c0_i32 = arith.constant 0 : i32
    %c0_i32_0 = arith.constant 0 : i32
    %c0_i32_1 = arith.constant 0 : i32
    return %c0_i32, %c0_i32_0 : i32, i32
  }
  func.func @transform_4(%arg0: i32) -> i32 {
    %c0_i32 = arith.constant 0 : i32
    %c0_i32_0 = arith.constant 0 : i32
    return %c0_i32 : i32
  }
  func.func @transform_5(%arg0: i32) -> (i32, i32, i32) {
    %c0_i32 = arith.constant 0 : i32
    %c0_i32_0 = arith.constant 0 : i32
    %c0_i32_1 = arith.constant 0 : i32
    return %arg0, %c0_i32, %c0_i32_0 : i32, i32, i32
  }
}

</mosaic_0001>

<bundles_post_ra>
// kernel: tpu_custom_call.1
= control target key start
LH: loop header
LB: loop body
LE: loop exit
PB: predicated region body
PF: predicated region fallthrough
CT: control target
= control target key end

     0   :  { %11 = vsyncpa [#allocation4], 0  ;;  %s1822_s0 = inlined_call_operand.hbm [shape: f32[8,16,32], index: 0, kind: input, shape index: {}]   ;;  %s1823_s1 = inlined_call_operand.hbm [shape: f32[32,32], index: 1, kind: input, shape index: {}]   ;;  %s1824_s2 = inlined_call_operand.vmem [shape: f32[1,32], index: 2, kind: input, shape index: {}]   ;;  %s1825_s3 = inlined_call_operand.vmem [shape: f32[1,32], index: 3, kind: input, shape index: {}]   ;;  %s1826_s4 = inlined_call_operand.<no memory space> [shape: f32[1], index: 4, kind: input, shape index: {}]   ;;  %s1827_s5 = inlined_call_operand.hbm [shape: f32[1,1,256], index: 5, kind: output, shape index: {}]  }
   0x1   :  { %12 = vsyncpa [#allocation7], 0 }
   0x2   :  { %13 = vsyncpa [#allocation5], 0  ;;  %s1329_s18 = smov [#allocation3]   ;;  %s1257_s22 = scalar_lea.hbm %s1822_s0, 2048 }
   0x3   :  { %s19_s19 = sshll.u32 %s1329_s18, 4  ;;  %p1258_p0 = scmp.ne.s32.totalorder %s1822_s0, %s1257_s22  ;;  %s20_s19 = int_to_ptr.vmem [resolvable:$true] %s19_s19 }
   0x4   :  { %p1261_p1 = scmp.lt.u32.totalorder %s1257_s22, %s1822_s0 }
   0x6   :  { %p1263_p2 = pnand %p1261_p1, %p1258_p0 }
   0x8   :  { %1266 = shalt.err (!%p1263_p2)
}
   0x9   :  { %s1267_s27 = scalar_lea.vmem %s20_s19, 2048  ;;  %p1272_p4 = scmp.lt.s32.totalorder %s20_s19, %s20_s19 }
   0xa   :  { %p1268_p3 = scmp.ne.s32.totalorder %s20_s19, %s1267_s27  ;;  %p1273_p5 = scmp.lt.s32.totalorder %s1267_s27, %s1267_s27 }
   0xc   :  { %p1274_p6 = por %p1273_p5, %p1272_p4 }
   0xe   :  { %p1275_p7 = pnand %p1274_p6, %p1268_p3 }
  0x10   :  { %1278 = shalt.err (!%p1275_p7)
}
  0x11   :  { %s1330_s28 = smov 128   ;;  %s1331_s29 = smov 8  }
  0x12   :  { %25 = dma.hbm_to_vmem [thread:$0]  %s1822_s0, 2048, %s20_s19, [#allocation4], %s1330_s28, %s1330_s28, %s1331_s29  }
  0x13   :  { %s1332_s7 = smov [#allocation6]   ;;  %s1279_s11 = scalar_lea.hbm %s1823_s1, 512 }
  0x14   :  { %s31_s8 = sshll.u32 %s1332_s7, 4  ;;  %p1280_p8 = scmp.ne.s32.totalorder %s1823_s1, %s1279_s11  ;;  %s32_s8 = int_to_ptr.vmem [resolvable:$true] %s31_s8 }
  0x15   :  { %p1283_p9 = scmp.lt.u32.totalorder %s1279_s11, %s1823_s1 }
  0x17   :  { %p1285_p10 = pnand %p1283_p9, %p1280_p8 }
  0x19   :  { %1288 = shalt.err (!%p1285_p10)
}
  0x1a   :  { %s1289_s16 = scalar_lea.vmem %s32_s8, 512  ;;  %p1294_p12 = scmp.lt.s32.totalorder %s32_s8, %s32_s8 }
  0x1b   :  { %p1290_p11 = scmp.ne.s32.totalorder %s32_s8, %s1289_s16  ;;  %p1295_p13 = scmp.lt.s32.totalorder %s1289_s16, %s1289_s16 }
  0x1d   :  { %p1296_p0 = por %p1295_p13, %p1294_p12 }
  0x1f   :  { %p1297_p1 = pnand %p1296_p0, %p1290_p11 }
  0x21   :  { %1300 = shalt.err (!%p1297_p1)
}
  0x22   :  { %37 = dma.hbm_to_vmem [thread:$0]  %s1823_s1, 512, %s32_s8, [#allocation7], %s1330_s28, %s1330_s28, %s1331_s29  }
  0x23   :  { %1323 = dma.done.wait [#allocation4], 2048  }
  0x24   :  { %1324 = vsyncadd [#allocation4], 4294965248 }
  0x25   :  { %1325 = dma.done.wait [#allocation7], 512  }
  0x26   :  { %1326 = vsyncadd [#allocation7], 4294966784  ;;  %vm77_vm0 = vcmask 261120   ;;  %v66_v0 = vld [vmem:[#allocation6] sm:$0xff]  ;;  %v67_v1 = vld [vmem:[#allocation6 + $0x8] sm:$0xff]  ;;  %vm403_vm1 = vcmask 130112  }
  0x27   :  { %v68_v2 = vld [vmem:[#allocation6 + $0x10] sm:$0xff]  ;;  %v1164_v3 = vpack.c.bf16 %v67_v1, %v66_v0  ;;  %v69_v4 = vld [vmem:[#allocation6 + $0x18] sm:$0xff]  ;;  %v50_v5 = vld [vmem:[#allocation3] sm:$0xff]  ;;  %vm468_vm2 = vcmask 1041409   ;;  %vm470_vm3 = vcmask 1042434   ;;  %vm472_vm4 = vcmask 1043459  }
  0x28   :  { %v58_v6 = vld [vmem:[#allocation3 + $0x40] sm:$0xff]  ;;  %v1168_v7 = vpack.c.bf16 %v69_v4, %v68_v2  ;;  %1140 = vmatprep.mubr.msk.f32.mxu0 %vm77_vm0, %v50_v5  ;;  %v1395_v8 = vld [vmem:[#allocation3 + $0x8] sm:$0xff]  ;;  %v1397_v10 = vld [vmem:[#allocation3 + $0x10] sm:$0xff]  ;;  %vm474_vm5 = vcmask 1044484   ;;  %vm476_vm6 = vcmask 1045509   ;;  %vm478_vm7 = vcmask 1046534  }
  0x29   :  { %1152 = vmatprep.mubr.msk.f32.mxu1 %vm77_vm0, %v58_v6  ;;  %1165 = vmatprep.subr.bf16.mxu0 %v1164_v3  ;;  %v59_v9 = vld [vmem:[#allocation3 + $0x48] sm:$0xff]  ;;  %v1399_v11 = vld [vmem:[#allocation3 + $0x50] sm:$0xff]  ;;  %v1406_v12 = vld [vmem:[#allocation3 + $0x18] sm:$0xff]  ;;  %vm480_vm8 = vcmask 1047559   ;;  %vm483_vm9 = vcmask 130048   ;;  %s1336_s21 = smov 64  }
  0x2a   :  { %1172 = vmatprep.subr.bf16.mxu1 %v1164_v3  ;;  %1167 = vmatpush3.bf16.msra.mxu0 %v1164_v3  ;;  %v1410_v13 = vld [vmem:[#allocation3 + $0x58] sm:$0xff]  ;;  %v1412_v14 = vld [vmem:[#allocation3 + $0x20] sm:$0xff]  ;;  %v1422_v16 = vld [vmem:[#allocation3 + $0x28] sm:$0xff]  ;;  %s1337_s22 = smov 96   ;;  %s1338_s23 = smov [#allocation8]  }
  0x2b   :  { %1174 = vmatpush3.bf16.msra.mxu1 %v1164_v3  ;;  %1169 = vmatprep.subr.bf16.mxu0 %v1168_v7  ;;  %v1414_v15 = vld [vmem:[#allocation3 + $0x60] sm:$0xff]  ;;  %v1426_v17 = vld [vmem:[#allocation3 + $0x68] sm:$0xff]  ;;  %v1428_v18 = vld [vmem:[#allocation3 + $0x30] sm:$0xff]  ;;  %s1084_s24 = sshll.u32 %s1338_s23, 4  ;;  %s1085_s24 = int_to_ptr.vmem [resolvable:$true] %s1084_s24 }
  0x2c   :  { %1173 = vmatprep.subr.bf16.mxu1 %v1168_v7  ;;  %v1430_v19 = vld [vmem:[#allocation3 + $0x70] sm:$0xff]  ;;  %v1438_v20 = vld [vmem:[#allocation3 + $0x38] sm:$0xff]  ;;  %v1451_v22 = vld [vmem:[%s1824_s2] ss:$0 sm:$0xff]  ;;  %s1301_s25 = scalar_lea.vmem %s1085_s24, 32  ;;  %p1306_p3 = scmp.lt.s32.totalorder %s1085_s24, %s1085_s24 }
  0x2d   :  { %v1442_v21 = vld [vmem:[#allocation3 + $0x78] sm:$0xff]  ;;  %v1466_v45 = vld [vmem:[%s1825_s3] ss:$0 sm:$0xff]  ;;  %p1302_p2 = scmp.ne.s32.totalorder %s1085_s24, %s1301_s25  ;;  %p1307_p4 = scmp.lt.s32.totalorder %s1301_s25, %s1301_s25 }
  0x2e   :  { %1171 = vmatpush3.bf16.msra.mxu0 %v1168_v7 }
  0x2f   :  { %1175 = vmatpush3.bf16.msra.mxu1 %v1168_v7  ;;  %p1308_p5 = por %p1307_p4, %p1306_p3 }
  0x31   :  { %1141 = vmatmul.mubr.msk.f32.vlgmr.msra.gmra.mrb[0].mxu0 %vm77_vm0, %v1395_v8  ;;  %p1309_p6 = pnand %p1308_p5, %p1302_p2 }
  0x32   :  { %1153 = vmatmul.mubr.msk.f32.vlgmr.msra.gmra.mrb[0].mxu1 %vm77_vm0, %v59_v9  ;;  %1143 = vmatprep.mubr.msk.f32.mxu0 %vm77_vm0, %v1397_v10 }
  0x33   :  { %1155 = vmatprep.mubr.msk.f32.mxu1 %vm77_vm0, %v1399_v11 }
  0x35   :  { %1144 = vmatmul.mubr.msk.f32.gmra.mrb[2].mxu0 %vm77_vm0, %v1406_v12 }
  0x36   :  { %1156 = vmatmul.mubr.msk.f32.gmra.mrb[2].mxu1 %vm77_vm0, %v1410_v13  ;;  %1146 = vmatprep.mubr.msk.f32.mxu0 %vm77_vm0, %v1412_v14 }
  0x37   :  { %1158 = vmatprep.mubr.msk.f32.mxu1 %vm77_vm0, %v1414_v15 }
  0x39   :  { %1147 = vmatmul.mubr.msk.f32.gmra.mrb[4].mxu0 %vm77_vm0, %v1422_v16 }
  0x3a   :  { %1159 = vmatmul.mubr.msk.f32.gmra.mrb[4].mxu1 %vm77_vm0, %v1426_v17  ;;  %1149 = vmatprep.mubr.msk.f32.mxu0 %vm77_vm0, %v1428_v18 }
  0x3b   :  { %1161 = vmatprep.mubr.msk.f32.mxu1 %vm77_vm0, %v1430_v19 }
  0x3d   :  { %1150 = vmatmul.mubr.msk.f32.gmra.mrb[6].mxu0 %vm77_vm0, %v1438_v20 }
  0x3e   :  { %1162 = vmatmul.mubr.msk.f32.gmra.mrb[6].mxu1 %vm77_vm0, %v1442_v21 }
 0x104   :  { %v1142_v23 = vpop.f32.mrb[0].mxu0 }
 0x105   :  { %v1154_v24 = vpop.f32.mrb[0].mxu1  ;;  %v198_v25 = vadd.f32 %v1142_v23, %v1451_v22  ;;  %v192_v27 = vpop.f32.mrb[1].mxu0 }
 0x106   :  { %v238_v26 = vadd.f32 %v1154_v24, %v1451_v22  ;;  %v232_v28 = vpop.f32.mrb[1].mxu1  ;;  %v193_v29 = vadd.f32 %v1451_v22, %v192_v27 }
 0x107   :  { %v233_v30 = vadd.f32 %v1451_v22, %v232_v28  ;;  %1188 = vtanh.f32 %v198_v25 }
 0x108   :  { %1190 = vtanh.f32 %v238_v26  ;;  %v1145_v31 = vpop.f32.mrb[2].mxu0 }
 0x109   :  { %v1157_v32 = vpop.f32.mrb[2].mxu1  ;;  %1192 = vtanh.f32 %v193_v29  ;;  %v208_v33 = vadd.f32 %v1145_v31, %v1451_v22  ;;  %v202_v34 = vpop.f32.mrb[3].mxu0 }
 0x10a   :  { %v248_v35 = vadd.f32 %v1157_v32, %v1451_v22  ;;  %v242_v36 = vpop.f32.mrb[3].mxu1  ;;  %1194 = vtanh.f32 %v233_v30  ;;  %v203_v38 = vadd.f32 %v1451_v22, %v202_v34 }
 0x10b   :  { %1196 = vtanh.f32 %v208_v33  ;;  %v243_v37 = vadd.f32 %v1451_v22, %v242_v36 }
 0x10c   :  { %v1148_v39 = vpop.f32.mrb[4].mxu0  ;;  %1198 = vtanh.f32 %v248_v35 }
 0x10d   :  { %v1160_v40 = vpop.f32.mrb[4].mxu1  ;;  %v212_v41 = vpop.f32.mrb[5].mxu0  ;;  %v218_v43 = vadd.f32 %v1148_v39, %v1451_v22  ;;  %1200 = vtanh.f32 %v243_v37 }
 0x10e   :  { %v252_v42 = vpop.f32.mrb[5].mxu1  ;;  %v213_v44 = vadd.f32 %v1451_v22, %v212_v41  ;;  %1202 = vtanh.f32 %v203_v38  ;;  %v258_v54 = vadd.f32 %v1160_v40, %v1451_v22 }
 0x10f   :  { %v253_v49 = vadd.f32 %v1451_v22, %v252_v42 }
 0x110   :  { %v1151_v46 = vpop.f32.mrb[6].mxu0  ;;  %1204 = vtanh.f32 %v213_v44 }
 0x111   :  { %v1163_v47 = vpop.f32.mrb[6].mxu1  ;;  %v1189_v48 = vpop.eup %1188  ;;  %1206 = vtanh.f32 %v218_v43  ;;  %v228_v0 = vadd.f32 %v1151_v46, %v1451_v22 }
 0x112   :  { %v222_v50 = vpop.f32.mrb[7].mxu0  ;;  %v262_v51 = vpop.f32.mrb[7].mxu1  ;;  %v295_v53 = vmul.f32 %v1189_v48, %v1466_v45  ;;  %1208 = vtanh.f32 %v253_v49  ;;  %v268_v23 = vadd.f32 %v1163_v47, %v1451_v22 }
 0x113   :  { %v1191_v52 = vpop.eup %1190  ;;  %v223_v62 = vadd.f32 %v1451_v22, %v222_v50  ;;  %1210 = vtanh.f32 %v258_v54  ;;  %v263_v7 = vadd.f32 %v1451_v22, %v262_v51 }
 0x114   :  { %v1193_v55 = vpop.eup %1192  ;;  %v303_v56 = vmul.f32 %v1191_v52, %v1466_v45  ;;  %v313_v58 = vsel %vm77_vm0, %v295_v53, 0.0 }
 0x115   :  { %v1195_v57 = vpop.eup %1194  ;;  %v294_v59 = vmul.f32 %v1193_v55, %v1466_v45  ;;  %314 = vadd.xlane.f32.xlu0 %v313_v58  ;;  %1212 = vtanh.f32 %v223_v62 }
 0x116   :  { %v1197_v60 = vpop.eup %1196  ;;  %v337_v61 = vsel %vm77_vm0, %v303_v56, 0.0  ;;  %v302_v5 = vmul.f32 %v1195_v57, %v1466_v45  ;;  %1214 = vtanh.f32 %v228_v0  ;;  %v359_v0 = vstv %s1826_s4  ;;  %s1335_s4 = smov 32  }
 0x117   :  { %338 = vadd.xlane.f32.xlu1 %v337_v61  ;;  %v297_v63 = vmul.f32 %v1197_v60, %v1466_v45  ;;  %v1199_v1 = vpop.eup %1198  ;;  %v310_v3 = vsel %vm77_vm0, %v294_v59, 0.0  ;;  %1216 = vtanh.f32 %v263_v7  ;;  %v1828_v59 = vlaneseq }
 0x118   :  { %v305_v4 = vmul.f32 %v1199_v1, %v1466_v45  ;;  %v1201_v6 = vpop.eup %1200  ;;  %v334_v27 = vsel %vm77_vm0, %v302_v5, 0.0  ;;  %1218 = vtanh.f32 %v268_v23 }
 0x119   :  { %v319_v2 = vsel %vm77_vm0, %v297_v63, 0.0  ;;  %311 = vadd.xlane.f32.xlu0 %v310_v3  ;;  %v1203_v9 = vpop.eup %1202  ;;  %v304_v28 = vmul.f32 %v1201_v6, %v1466_v45  ;;  %v393_v62 = vand.u32 127, %v1828_v59  ;;  %v1511_v1 = vshrl.u32 %v1828_v59, 7 }
 0x11a   :  { %v1205_v24 = vpop.eup %1204  ;;  %v343_v25 = vsel %vm77_vm0, %v305_v4, 0.0  ;;  %v296_v29 = vmul.f32 %v1203_v9, %v1466_v45 }
 0x11b   :  { %320 = vadd.xlane.f32.xlu1 %v319_v2  ;;  %v1207_v26 = vpop.eup %1206  ;;  %v298_v30 = vmul.f32 %v1205_v24, %v1466_v45  ;;  %v340_v33 = vsel %vm77_vm0, %v304_v28, 0.0  ;;  %v398_v2 = vadd.s32 4294967288, %v393_v62  ;;  %v1522_v9 = vsub.s32 %v393_v62, %v1511_v1 }
 0x11c   :  { %v1209_v31 = vpop.eup %1208  ;;  %v299_v32 = vmul.f32 %v1207_v26, %v1466_v45  ;;  %v316_v34 = vsel %vm77_vm0, %v296_v29, 0.0 }
 0x11d   :  { %335 = vadd.xlane.f32.xlu0 %v334_v27  ;;  %v1211_v22 = vpop.eup %1210  ;;  %v322_v35 = vsel %vm77_vm0, %v298_v30, 0.0  ;;  %v306_v36 = vmul.f32 %v1209_v31, %v1466_v45 }
 0x11e   :  { %v325_v38 = vsel %vm77_vm0, %v299_v32, 0.0  ;;  %v307_v39 = vmul.f32 %v1211_v22, %v1466_v45 }
 0x11f   :  { %344 = vadd.xlane.f32.xlu1 %v343_v25  ;;  %v1213_v37 = vpop.eup %1212  ;;  %v346_v41 = vsel %vm77_vm0, %v306_v36, 0.0  ;;  %v1527_v25 = vsub.s32 %v398_v2, %v1511_v1 }
 0x120   :  { %v1215_v40 = vpop.eup %1214  ;;  %v300_v42 = vmul.f32 %v1213_v37, %v1466_v45  ;;  %v349_v44 = vsel %vm77_vm0, %v307_v39, 0.0 }
 0x121   :  { %341 = vadd.xlane.f32.xlu0 %v340_v33  ;;  %v1217_v43 = vpop.eup %1216  ;;  %v301_v46 = vmul.f32 %v1215_v40, %v1466_v45 }
 0x122   :  { %v1219_v47 = vpop.eup %1218  ;;  %v328_v48 = vsel %vm77_vm0, %v300_v42, 0.0  ;;  %v308_v49 = vmul.f32 %v1217_v43, %v1466_v45 }
 0x123   :  { %317 = vadd.xlane.f32.xlu1 %v316_v34  ;;  %v331_v50 = vsel %vm77_vm0, %v301_v46, 0.0  ;;  %v309_v51 = vmul.f32 %v1219_v47, %v1466_v45 }
 0x124   :  { %v352_v52 = vsel %vm77_vm0, %v308_v49, 0.0 }
 0x125   :  { %323 = vadd.xlane.f32.xlu0 %v322_v35  ;;  %v355_v53 = vsel %vm77_vm0, %v309_v51, 0.0 }
 0x127   :  { %326 = vadd.xlane.f32.xlu1 %v325_v38 }
 0x129   :  { %347 = vadd.xlane.f32.xlu0 %v346_v41 }
 0x12b   :  { %350 = vadd.xlane.f32.xlu1 %v349_v44 }
 0x12d   :  { %329 = vadd.xlane.f32.xlu0 %v328_v48 }
 0x12f   :  { %332 = vadd.xlane.f32.xlu1 %v331_v50 }
 0x131   :  { %353 = vadd.xlane.f32.xlu0 %v352_v52 }
 0x133   :  { %356 = vadd.xlane.f32.xlu1 %v355_v53 }
 0x1a2   :  { %v315_v54 = vpop.xlane.xlu0 %314 }
 0x1a3   :  { %v1529_v27 = vadd.f32 %v359_v0, %v315_v54 }
 0x1a4   :  { %v339_v55 = vpop.xlane.xlu1 %338 }
 0x1a5   :  { %v1539_v32 = vadd.f32 %v359_v0, %v339_v55  ;;  %v402_v40 = vrot.slane %v1529_v27, %v1527_v25 }
 0x1a6   :  { %v312_v56 = vpop.xlane.xlu0 %311 }
 0x1a7   :  { %v1524_v23 = vadd.f32 %v359_v0, %v312_v56  ;;  %v439_v48 = vrot.slane %v1539_v32, %v1527_v25 }
 0x1a8   :  { %v321_v57 = vpop.xlane.xlu1 %320 }
 0x1a9   :  { %v1519_v7 = vadd.f32 %v359_v0, %v321_v57  ;;  %v397_v33 = vrot.slane %v1524_v23, %v1522_v9 }
 0x1aa   :  { %v336_v58 = vpop.xlane.xlu0 %335 }
 0x1ab   :  { %v1533_v29 = vadd.f32 %v359_v0, %v336_v58  ;;  %v412_v22 = vrot.slane %v1519_v7, %v1527_v25  ;;  %v404_v49 = vsel %vm403_vm1, %v402_v40, %v397_v33  ;;  %v494_v40 = vsub.s32 1, %v1511_v1 }
 0x1ac   :  { %v345_v60 = vpop.xlane.xlu1 %344 }
 0x1ad   :  { %v1555_v41 = vadd.f32 %v359_v0, %v345_v60  ;;  %v435_v44 = vrot.slane %v1533_v29, %v1522_v9 }
 0x1ae   :  { %v342_v61 = vpop.xlane.xlu0 %341 }
 0x1af   :  { %v1545_v34 = vadd.f32 %v359_v0, %v342_v61  ;;  %v448_v58 = vrot.slane %v1555_v41, %v1527_v25 }
 0x1b0   :  { %v318_v63 = vpop.xlane.xlu1 %317 }
 0x1b1   :  { %v1513_v4 = vadd.f32 %v359_v0, %v318_v63  ;;  %v444_v50 = vrot.slane %v1545_v34, %v1522_v9  ;;  %v440_v63 = vsel %vm403_vm1, %v439_v48, %v435_v44 }
 0x1b2   :  { %v324_v45 = vpop.xlane.xlu0 %323 }
 0x1b3   :  { %v1517_v6 = vadd.f32 %v359_v0, %v324_v45  ;;  %v408_v28 = vrot.slane %v1513_v4, %v1522_v9 }
 0x1b4   :  { %v327_v3 = vpop.xlane.xlu1 %326 }
 0x1b5   :  { %v1515_v5 = vadd.f32 %v359_v0, %v327_v3  ;;  %v417_v31 = vrot.slane %v1517_v6, %v1522_v9  ;;  %v413_v42 = vsel %vm403_vm1, %v412_v22, %v408_v28  ;;  %v449_v3 = vsel %vm403_vm1, %v448_v58, %v444_v50 }
 0x1b6   :  { %v348_v24 = vpop.xlane.xlu0 %347  ;;  %v469_v53 = vsel %vm468_vm2, %v413_v42, %v404_v49  ;;  %v498_v50 = vsub.s32 2, %v1511_v1 }
 0x1b7   :  { %v421_v30 = vrot.slane %v1515_v5, %v1527_v25  ;;  %v1549_v37 = vadd.f32 %v359_v0, %v348_v24 }
 0x1b8   :  { %v351_v26 = vpop.xlane.xlu1 %350 }
 0x1b9   :  { %v1547_v36 = vadd.f32 %v359_v0, %v351_v26  ;;  %v422_v46 = vsel %vm403_vm1, %v421_v30, %v417_v31  ;;  %v453_v55 = vrot.slane %v1549_v37, %v1522_v9 }
 0x1ba   :  { %v330_v35 = vpop.xlane.xlu0 %329  ;;  %v471_v60 = vsel %vm470_vm3, %v422_v46, %v469_v53 }
 0x1bb   :  { %v1551_v39 = vadd.f32 %v359_v0, %v330_v35  ;;  %v457_v54 = vrot.slane %v1547_v36, %v1527_v25  ;;  %v1333_v35 = vmov 0  }
 0x1bc   :  { %v333_v38 = vpop.xlane.xlu1 %332  ;;  %1187 = vset.pattern.permute.xlu0 %v1333_v35  ;;  %1186 = vset.pattern.permute.xlu1 %v1333_v35 }
 0x1bd   :  { %v1558_v43 = vadd.f32 %v359_v0, %v333_v38  ;;  %v426_v47 = vrot.slane %v1551_v39, %v1522_v9  ;;  %v458_v28 = vsel %vm403_vm1, %v457_v54, %v453_v55  ;;  %v490_v38 = vsub.s32 0, %v1511_v1 }
 0x1be   :  { %v354_v52 = vpop.xlane.xlu0 %353 }
 0x1bf   :  { %v430_v51 = vrot.slane %v1558_v43, %v1527_v25  ;;  %v1577_v57 = vadd.f32 %v359_v0, %v354_v52  ;;  %v514_v52 = vsub.s32 6, %v1511_v1 }
 0x1c0   :  { %v357_v56 = vpop.xlane.xlu1 %356 }
 0x1c1   :  { %v431_v61 = vsel %vm403_vm1, %v430_v51, %v426_v47  ;;  %v1583_v62 = vadd.f32 %v359_v0, %v357_v56  ;;  %v462_v2 = vrot.slane %v1577_v57, %v1522_v9  ;;  %v510_v47 = vsub.s32 5, %v1511_v1 }
 0x1c2   :  { %v473_v45 = vsel %vm472_vm4, %v431_v61, %v471_v60  ;;  %v502_v61 = vsub.s32 3, %v1511_v1 }
 0x1c3   :  { %v466_v24 = vrot.slane %v1583_v62, %v1527_v25  ;;  %v475_v26 = vsel %vm474_vm5, %v440_v63, %v473_v45 }
 0x1c4   :  { %v477_v0 = vsel %vm476_vm6, %v449_v3, %v475_v26 }
 0x1c5   :  { %v467_v30 = vsel %vm403_vm1, %v466_v24, %v462_v2  ;;  %v479_v31 = vsel %vm478_vm7, %v458_v28, %v477_v0 }
 0x1c6   :  { %v481_v22 = vsel %vm480_vm8, %v467_v30, %v479_v31 }
 0x1c7   :  { %v484_v33 = vsel %vm483_vm9, %v481_v22, -inf }
 0x1c8   :  { %485 = vmax.xlane.f32.xlu0 %v484_v33 }
 0x255   :  { %v486_v42 = vpop.xlane.xlu0 %485 }
 0x256   :  { %v491_v44 = vrot.slane %v486_v42, %v490_v38  ;;  %v495_v46 = vrot.slane %v486_v42, %v494_v40  ;;  %v1613_v53 = vrot.slane %v486_v42, %v510_v47  ;;  %v499_v56 = vrot.slane %v486_v42, %v498_v50 }
 0x257   :  { %v503_v24 = vrot.slane %v486_v42, %v502_v61 }
 0x258   :  { %v528_v48 = vsub.f32 %v1524_v23, %v491_v44  ;;  %v529_v49 = vsub.f32 %v1529_v27, %v491_v44  ;;  %v530_v51 = vsub.f32 %v1513_v4, %v495_v46  ;;  %v531_v58 = vsub.f32 %v1519_v7, %v495_v46 }
 0x259   :  { %v518_v27 = vsub.s32 7, %v1511_v1  ;;  %v1621_v4 = vrot.slane %v486_v42, %v514_v52  ;;  %v538_v60 = vsub.f32 %v1545_v34, %v1613_v53  ;;  %v532_v63 = vsub.f32 %v1517_v6, %v499_v56 }
 0x25a   :  { %v544_v54 = vmul.f32 1.442695, %v528_v48  ;;  %v546_v55 = vmul.f32 1.442695, %v529_v49  ;;  %v548_v23 = vmul.f32 1.442695, %v530_v51  ;;  %v533_v26 = vsub.f32 %v1515_v5, %v499_v56 }
 0x25b   :  { %v550_v45 = vmul.f32 1.442695, %v531_v58  ;;  %v519_v7 = vrot.slane %v486_v42, %v518_v27  ;;  %v540_v2 = vsub.f32 %v1549_v37, %v1621_v4  ;;  %v564_v3 = vmul.f32 1.442695, %v538_v60 }
 0x25c   :  { %1220 = vpow2.f32 %v544_v54  ;;  %v552_v34 = vmul.f32 1.442695, %v532_v63  ;;  %v506_v37 = vsub.s32 4, %v1511_v1  ;;  %v534_v31 = vsub.f32 %v1551_v39, %v503_v24 }
 0x25d   :  { %1222 = vpow2.f32 %v546_v55  ;;  %v542_v6 = vsub.f32 %v1577_v57, %v519_v7  ;;  %v568_v0 = vmul.f32 1.442695, %v540_v2  ;;  %v554_v22 = vmul.f32 1.442695, %v533_v26 }
 0x25e   :  { %1224 = vpow2.f32 %v548_v23  ;;  %v507_v57 = vrot.slane %v486_v42, %v506_v37  ;;  %v535_v35 = vsub.f32 %v1558_v43, %v503_v24  ;;  %v556_v44 = vmul.f32 1.442695, %v534_v31 }
 0x25f   :  { %1226 = vpow2.f32 %v550_v45  ;;  %v572_v33 = vmul.f32 1.442695, %v542_v6  ;;  %v539_v56 = vsub.f32 %v1555_v41, %v1613_v53  ;;  %v543_v45 = vsub.f32 %v1583_v62, %v519_v7 }
 0x260   :  { %1228 = vpow2.f32 %v564_v3  ;;  %v536_v48 = vsub.f32 %v1533_v29, %v507_v57  ;;  %v558_v49 = vmul.f32 1.442695, %v535_v35  ;;  %v537_v42 = vsub.f32 %v1539_v32, %v507_v57 }
 0x261   :  { %1230 = vpow2.f32 %v552_v34  ;;  %v541_v32 = vsub.f32 %v1547_v36, %v1621_v4  ;;  %v566_v60 = vmul.f32 1.442695, %v539_v56  ;;  %v574_v2 = vmul.f32 1.442695, %v543_v45 }
 0x262   :  { %1232 = vpow2.f32 %v568_v0  ;;  %v560_v54 = vmul.f32 1.442695, %v536_v48  ;;  %v562_v58 = vmul.f32 1.442695, %v537_v42 }
 0x263   :  { %1234 = vpow2.f32 %v554_v22  ;;  %v570_v41 = vmul.f32 1.442695, %v541_v32 }
 0x264   :  { %1236 = vpow2.f32 %v572_v33 }
 0x265   :  { %1238 = vpow2.f32 %v556_v44 }
 0x266   :  { %v1634_v28 = vpop.eup %1220  ;;  %1240 = vpow2.f32 %v558_v49 }
 0x267   :  { %v1637_v30 = vpop.eup %1222  ;;  %593 = vperm.xlu1 %1186, %v1634_v28   ;;  %1242 = vpow2.f32 %v560_v54 }
 0x268   :  { %596 = vperm.xlu0 %1187, %v1637_v30   ;;  %v1643_v5 = vpop.eup %1224  ;;  %1244 = vpow2.f32 %v562_v58 }
 0x269   :  { %v1649_v46 = vpop.eup %1226  ;;  %1246 = vpow2.f32 %v566_v60 }
 0x26a   :  { %v1652_v39 = vpop.eup %1228  ;;  %1248 = vpow2.f32 %v570_v41 }
 0x26b   :  { %599 = vperm.xlu1 %1186, %v1643_v5   ;;  %v1656_v51 = vpop.eup %1230  ;;  %1250 = vpow2.f32 %v574_v2 }
 0x26c   :  { %623 = vperm.xlu0 %1187, %v1652_v39   ;;  %v1659_v43 = vpop.eup %1232 }
 0x26d   :  { %v1663_v55 = vpop.eup %1234 }
 0x26e   :  { %v1666_v29 = vpop.eup %1236 }
 0x26f   :  { %602 = vperm.xlu1 %1186, %v1649_v46   ;;  %v1671_v23 = vpop.eup %1238 }
 0x270   :  { %629 = vperm.xlu0 %1187, %v1659_v43   ;;  %v1676_v63 = vpop.eup %1240 }
 0x271   :  { %v1680_v53 = vpop.eup %1242 }
 0x272   :  { %v1683_v3 = vpop.eup %1244 }
 0x273   :  { %605 = vperm.xlu1 %1186, %v1656_v51   ;;  %v1686_v36 = vpop.eup %1246 }
 0x274   :  { %635 = vperm.xlu0 %1187, %v1666_v29   ;;  %v1689_v4 = vpop.eup %1248 }
 0x275   :  { %v1692_v62 = vpop.eup %1250 }
 0x277   :  { %608 = vperm.xlu1 %1186, %v1663_v55  }
 0x27b   :  { %611 = vperm.xlu1 %1186, %v1671_v23  }
 0x27f   :  { %614 = vperm.xlu1 %1186, %v1676_v63  }
 0x283   :  { %617 = vperm.xlu1 %1186, %v1680_v53  }
 0x287   :  { %620 = vperm.xlu1 %1186, %v1683_v3  }
 0x28b   :  { %626 = vperm.xlu1 %1186, %v1686_v36  }
 0x28f   :  { %632 = vperm.xlu1 %1186, %v1689_v4  }
 0x293   :  { %638 = vperm.xlu1 %1186, %v1692_v62  }
 0x2e6   :  { %v594_v7 = vpop.permute.xlu1 %593 }
 0x2e7   :  { %v597_v31 = vpop.permute.xlu0 %596  ;;  %v643_v56 = vrot.slane %v594_v7, %v1522_v9 }
 0x2e8   :  { %v647_v54 = vrot.slane %v597_v31, %v1527_v25 }
 0x2ea   :  { %v600_v24 = vpop.permute.xlu1 %599  ;;  %v648_v7 = vsel %vm403_vm1, %v647_v54, %v643_v56 }
 0x2eb   :  { %v624_v57 = vpop.permute.xlu0 %623  ;;  %v652_v58 = vrot.slane %v600_v24, %v1522_v9 }
 0x2ec   :  { %v688_v24 = vrot.slane %v624_v57, %v1522_v9 }
 0x2ee   :  { %v603_v26 = vpop.permute.xlu1 %602 }
 0x2ef   :  { %v656_v44 = vrot.slane %v603_v26, %v1527_v25  ;;  %v630_v48 = vpop.permute.xlu0 %629 }
 0x2f1   :  { %v657_v41 = vsel %vm403_vm1, %v656_v44, %v652_v58 }
 0x2f2   :  { %v606_v34 = vpop.permute.xlu1 %605  ;;  %v712_v44 = vsel %vm468_vm2, %v657_v41, %v648_v7 }
 0x2f3   :  { %v661_v60 = vrot.slane %v606_v34, %v1522_v9 }
 0x2f6   :  { %v609_v6 = vpop.permute.xlu1 %608 }
 0x2f7   :  { %v665_v49 = vrot.slane %v609_v6, %v1527_v25 }
 0x2f9   :  { %v666_v6 = vsel %vm403_vm1, %v665_v49, %v661_v60 }
 0x2fa   :  { %v612_v0 = vpop.permute.xlu1 %611  ;;  %v713_v49 = vsel %vm470_vm3, %v666_v6, %v712_v44 }
 0x2fb   :  { %v670_v2 = vrot.slane %v612_v0, %v1522_v9  ;;  %v636_v0 = vpop.permute.xlu0 %635 }
 0x2fc   :  { %v706_v56 = vrot.slane %v636_v0, %v1522_v9 }
 0x2fe   :  { %v615_v22 = vpop.permute.xlu1 %614 }
 0x2ff   :  { %v674_v32 = vrot.slane %v615_v22, %v1527_v25 }
 0x301   :  { %v675_v22 = vsel %vm403_vm1, %v674_v32, %v670_v2 }
 0x302   :  { %v618_v33 = vpop.permute.xlu1 %617  ;;  %v714_v58 = vsel %vm472_vm4, %v675_v22, %v713_v49  ;;  %v1334_v49 = vmov 1966171168  }
 0x303   :  { %v679_v31 = vrot.slane %v618_v33, %v1522_v9 }
 0x306   :  { %v621_v35 = vpop.permute.xlu1 %620 }
 0x307   :  { %v683_v45 = vrot.slane %v621_v35, %v1527_v25  ;;  %v697_v35 = vrot.slane %v630_v48, %v1522_v9 }
 0x30a   :  { %v627_v42 = vpop.permute.xlu1 %626 }
 0x30b   :  { %v692_v26 = vrot.slane %v627_v42, %v1527_v25  ;;  %v684_v42 = vsel %vm403_vm1, %v683_v45, %v679_v31 }
 0x30d   :  { %v693_v33 = vsel %vm403_vm1, %v692_v26, %v688_v24 }
 0x30e   :  { %v633_v59 = vpop.permute.xlu1 %632 }
 0x30f   :  { %v701_v34 = vrot.slane %v633_v59, %v1527_v25  ;;  %v715_v59 = vsel %vm474_vm5, %v684_v42, %v714_v58 }
 0x310   :  { %v716_v32 = vsel %vm476_vm6, %v693_v33, %v715_v59  ;;  %v956_v33 = vunpack.c.l.s4 %v1334_v49 }
 0x311   :  { %v702_v54 = vsel %vm403_vm1, %v701_v34, %v697_v35 }
 0x312   :  { %v639_v57 = vpop.permute.xlu1 %638  ;;  %v717_v45 = vsel %vm478_vm7, %v702_v54, %v716_v32 }
 0x313   :  { %v710_v48 = vrot.slane %v639_v57, %v1527_v25 }
 0x315   :  { %v711_v60 = vsel %vm403_vm1, %v710_v48, %v706_v56 }
 0x316   :  { %v718_v41 = vsel %vm480_vm8, %v711_v60, %v717_v45 }
 0x317   :  { %v720_v2 = vsel %vm483_vm9, %v718_v41, 0.0 }
 0x318   :  { %721 = vadd.xlane.f32.xlu0 %v720_v2 }
 0x3a5   :  { %v722_v26 = vpop.xlane.xlu0 %721 }
 0x3a6   :  { %1252 = vrcp.f32 %v722_v26 }
 0x3b0   :  { %v1253_v6 = vpop.eup %1252 }
 0x3b1   :  { %v740_v9 = vrot.slane %v1253_v6, %v502_v61  ;;  %v732_v25 = vrot.slane %v1253_v6, %v494_v40  ;;  %v744_v24 = vrot.slane %v1253_v6, %v506_v37  ;;  %v748_v35 = vrot.slane %v1253_v6, %v510_v47 }
 0x3b3   :  { %v771_v31 = vmul.f32 %v1671_v23, %v740_v9  ;;  %v767_v7 = vmul.f32 %v1643_v5, %v732_v25  ;;  %v773_v22 = vmul.f32 %v1680_v53, %v744_v24  ;;  %v768_v34 = vmul.f32 %v1649_v46, %v732_v25 }
 0x3b4   :  { %v775_v40 = vmul.f32 %v1652_v39, %v748_v35  ;;  %v776_v61 = vmul.f32 %v1686_v36, %v748_v35  ;;  %v736_v5 = vrot.slane %v1253_v6, %v498_v50  ;;  %v752_v46 = vrot.slane %v1253_v6, %v514_v52 }
 0x3b5   :  { %813 = vperm.xlu0 %1187, %v771_v31   ;;  %793 = vperm.xlu1 %1186, %v767_v7   ;;  %v772_v53 = vmul.f32 %v1676_v63, %v740_v9  ;;  %v756_v50 = vrot.slane %v1253_v6, %v518_v27  ;;  %v728_v52 = vrot.slane %v1253_v6, %v490_v38 }
 0x3b6   :  { %v769_v37 = vmul.f32 %v1656_v51, %v736_v5  ;;  %v770_v23 = vmul.f32 %v1663_v55, %v736_v5  ;;  %v777_v47 = vmul.f32 %v1659_v43, %v752_v46  ;;  %v778_v39 = vmul.f32 %v1689_v4, %v752_v46 }
 0x3b7   :  { %v779_v51 = vmul.f32 %v1666_v29, %v756_v50  ;;  %v780_v55 = vmul.f32 %v1692_v62, %v756_v50  ;;  %v765_v43 = vmul.f32 %v1634_v28, %v728_v52  ;;  %v766_v36 = vmul.f32 %v1637_v30, %v728_v52 }
 0x3b8   :  { %v774_v63 = vmul.f32 %v1683_v3, %v744_v24 }
 0x3b9   :  { %823 = vperm.xlu0 %1187, %v773_v22   ;;  %798 = vperm.xlu1 %1186, %v768_v34  }
 0x3bd   :  { %833 = vperm.xlu1 %1186, %v775_v40  }
 0x3c1   :  { %838 = vperm.xlu1 %1186, %v776_v61  }
 0x3c5   :  { %803 = vperm.xlu1 %1186, %v769_v37  }
 0x3c9   :  { %808 = vperm.xlu1 %1186, %v770_v23  }
 0x3cd   :  { %843 = vperm.xlu1 %1186, %v777_v47  }
 0x3d1   :  { %848 = vperm.xlu1 %1186, %v778_v39  }
 0x3d5   :  { %818 = vperm.xlu1 %1186, %v772_v53  }
 0x3d9   :  { %853 = vperm.xlu1 %1186, %v779_v51  }
 0x3dd   :  { %858 = vperm.xlu1 %1186, %v780_v55  }
 0x3e1   :  { %783 = vperm.xlu1 %1186, %v765_v43  }
 0x3e5   :  { %788 = vperm.xlu1 %1186, %v766_v36  }
 0x3e9   :  { %828 = vperm.xlu1 %1186, %v774_v63  }
 0x434   :  { %v794_v27 = vpop.permute.xlu1 %793  ;;  %v814_v61 = vpop.permute.xlu0 %813 }
 0x435   :  { %v863_v4 = vmul.f32 %v794_v27, %v1397_v10  ;;  %v957_v10 = vunpack.c.0.s8 %v956_v33  ;;  %v867_v39 = vmul.f32 %v814_v61, %v1428_v18 }
 0x437   :  { %v886_v62 = vsel %vm77_vm0, %v863_v4, 0.0  ;;  %v1768_v41 = vsub.s32 %v957_v10, %v1511_v1 }
 0x438   :  { %v799_v29 = vpop.permute.xlu1 %798 }
 0x439   :  { %v864_v44 = vmul.f32 %v799_v29, %v1406_v12 }
 0x43b   :  { %v887_v38 = vsel %vm77_vm0, %v864_v44, 0.0 }
 0x43c   :  { %v888_v0 = vadd.f32 %v887_v38, %v886_v62  ;;  %v834_v42 = vpop.permute.xlu1 %833 }
 0x43d   :  { %v871_v30 = vmul.f32 %v834_v42, %v1399_v11 }
 0x43e   :  { %v889_v28 = vrot.slane %v888_v0, 4 }
 0x43f   :  { %v922_v56 = vsel %vm77_vm0, %v871_v30, 0.0 }
 0x440   :  { %v890_v58 = vadd.f32 %v889_v28, %v888_v0  ;;  %v839_v3 = vpop.permute.xlu1 %838 }
 0x441   :  { %v872_v54 = vmul.f32 %v839_v3, %v1410_v13 }
 0x442   :  { %v891_v57 = vrot.slane %v890_v58, 2 }
 0x443   :  { %v923_v12 = vsel %vm77_vm0, %v872_v54, 0.0 }
 0x444   :  { %v892_v59 = vadd.f32 %v891_v57, %v890_v58  ;;  %v924_v48 = vadd.f32 %v923_v12, %v922_v56  ;;  %v804_v32 = vpop.permute.xlu1 %803 }
 0x445   :  { %v865_v11 = vmul.f32 %v804_v32, %v1412_v14 }
 0x446   :  { %v893_v60 = vrot.slane %v892_v59, 1  ;;  %v925_v45 = vrot.slane %v924_v48, 4 }
 0x447   :  { %v895_v31 = vsel %vm77_vm0, %v865_v11, 0.0  ;;  %v824_v11 = vpop.permute.xlu0 %823 }
 0x448   :  { %v926_v2 = vadd.f32 %v925_v45, %v924_v48  ;;  %v809_v26 = vpop.permute.xlu1 %808  ;;  %v894_v6 = vadd.f32 %v893_v60, %v892_v59  ;;  %v1254_v60 = vld [vmem:[#allocation3] sm:$0xff] }
 0x449   :  { %v866_v13 = vmul.f32 %v809_v26, %v1422_v16 }
 0x44a   :  { %v927_v9 = vrot.slane %v926_v2, 2  ;;  %v961_v25 = vrot.slane %v894_v6, %v1768_v41 }
 0x44b   :  { %v896_v7 = vsel %vm77_vm0, %v866_v13, 0.0 }
 0x44c   :  { %v928_v24 = vadd.f32 %v927_v9, %v926_v2  ;;  %v897_v22 = vadd.f32 %v896_v7, %v895_v31  ;;  %v844_v34 = vpop.permute.xlu1 %843  ;;  %v968_v1 = vrot.slane %v961_v25, %v1768_v41  ;;  %v1255_v31 = vld [vmem:[#allocation3 + $0x40] sm:$0xff] }
 0x44d   :  { %v873_v14 = vmul.f32 %v844_v34, %v1414_v15  ;;  %v869_v7 = vmul.f32 %v1255_v31, %v824_v11 }
 0x44e   :  { %v929_v35 = vrot.slane %v928_v24, 1  ;;  %v898_v40 = vrot.slane %v897_v22, 4  ;;  %969 = vrot.lane.b32.xlu0 %v968_v1, %s1335_s4 }
 0x44f   :  { %v931_v53 = vsel %vm77_vm0, %v873_v14, 0.0  ;;  %v1256_v14 = vld [vmem:[#allocation3 + $0x48] sm:$0xff] }
 0x450   :  { %v899_v16 = vadd.f32 %v898_v40, %v897_v22  ;;  %v849_v5 = vpop.permute.xlu1 %848  ;;  %v930_v37 = vadd.f32 %v929_v35, %v928_v24 }
 0x451   :  { %v874_v23 = vmul.f32 %v849_v5, %v1426_v17  ;;  %v904_v17 = vsel %vm77_vm0, %v867_v39, 0.0 }
 0x452   :  { %v900_v46 = vrot.slane %v899_v16, 2  ;;  %v1028_v47 = vrot.slane %v930_v37, %v1768_v41 }
 0x453   :  { %v932_v50 = vsel %vm77_vm0, %v874_v23, 0.0 }
 0x454   :  { %v901_v51 = vadd.f32 %v900_v46, %v899_v16  ;;  %v933_v55 = vadd.f32 %v932_v50, %v931_v53  ;;  %v819_v52 = vpop.permute.xlu1 %818  ;;  %v1035_v15 = vrot.slane %v1028_v47, %v1768_v41 }
 0x455   :  { %v868_v43 = vmul.f32 %v819_v52, %v1438_v20 }
 0x456   :  { %v902_v36 = vrot.slane %v901_v51, 1  ;;  %v934_v63 = vrot.slane %v933_v55, 4  ;;  %1036 = vrot.lane.b32.xlu1 %v1035_v15, %s1335_s4 }
 0x457   :  { %v905_v27 = vsel %vm77_vm0, %v868_v43, 0.0 }
 0x458   :  { %v935_v4 = vadd.f32 %v934_v63, %v933_v55  ;;  %v906_v18 = vadd.f32 %v905_v27, %v904_v17  ;;  %v854_v29 = vpop.permute.xlu1 %853  ;;  %v903_v44 = vadd.f32 %v902_v36, %v901_v51  ;;  %v1830_v36 = vlaneseq }
 0x459   :  { %v875_v42 = vmul.f32 %v854_v29, %v1430_v19 }
 0x45a   :  { %v936_v62 = vrot.slane %v935_v4, 2  ;;  %v907_v38 = vrot.slane %v906_v18, 4  ;;  %v983_v0 = vrot.slane %v903_v44, %v1768_v41  ;;  %vm951_vm10 = vcmp.lt.s32.totalorder %v1830_v36, 32 }
 0x45b   :  { %v940_v54 = vsel %vm77_vm0, %v875_v42, 0.0  ;;  %vm972_vm11 = vcmp.ge.s32.totalorder %v1830_v36, 32  ;;  %vm973_vm12 = vcmp.lt.s32.totalorder %v1830_v36, 64  ;;  %vm994_vm14 = vcmp.ge.s32.totalorder %v1830_v36, 64 }
 0x45c   :  { %v937_v28 = vadd.f32 %v936_v62, %v935_v4  ;;  %v908_v49 = vadd.f32 %v907_v38, %v906_v18  ;;  %v859_v20 = vpop.permute.xlu1 %858  ;;  %v990_v33 = vrot.slane %v983_v0, %v1768_v41  ;;  %vm974_vm13 = vmand %vm972_vm11, %vm973_vm12  ;;  %vm995_vm15 = vcmp.lt.s32.totalorder %v1830_v36, 96 }
 0x45d   :  { %v876_v30 = vmul.f32 %v859_v20, %v1442_v21  ;;  %vm1016_vm1 = vcmp.ge.s32.totalorder %v1830_v36, 96  ;;  %vm1017_vm2 = vcmp.lt.s32.totalorder %v1830_v36, 128 }
 0x45e   :  { %v938_v58 = vrot.slane %v937_v28, 1  ;;  %v909_v3 = vrot.slane %v908_v49, 2  ;;  %991 = vrot.lane.b32.xlu0 %v990_v33, %s1336_s21  ;;  %vm1018_vm3 = vmand %vm1016_vm1, %vm1017_vm2 }
 0x45f   :  { %v941_v57 = vsel %vm77_vm0, %v876_v30, 0.0 }
 0x460   :  { %v910_v10 = vadd.f32 %v909_v3, %v908_v49  ;;  %v942_v56 = vadd.f32 %v941_v57, %v940_v54  ;;  %v784_v12 = vpop.permute.xlu1 %783  ;;  %v939_v59 = vadd.f32 %v938_v58, %v937_v28 }
 0x461   :  { %v861_v45 = vmul.f32 %v1254_v60, %v784_v12 }
 0x462   :  { %v911_v19 = vrot.slane %v910_v10, 1  ;;  %v943_v48 = vrot.slane %v942_v56, 4  ;;  %v1047_v32 = vrot.slane %v939_v59, %v1768_v41 }
 0x463   :  { %v877_v24 = vsel %vm77_vm0, %v861_v45, 0.0 }
 0x464   :  { %v944_v21 = vadd.f32 %v943_v48, %v942_v56  ;;  %v789_v2 = vpop.permute.xlu1 %788  ;;  %v1054_v26 = vrot.slane %v1047_v32, %v1768_v41  ;;  %v912_v6 = vadd.f32 %v911_v19, %v910_v10 }
 0x465   :  { %v862_v13 = vmul.f32 %v789_v2, %v1395_v8  ;;  %v913_v8 = vsel %vm77_vm0, %v869_v7, 0.0 }
 0x466   :  { %v945_v9 = vrot.slane %v944_v21, 2  ;;  %1055 = vrot.lane.b32.xlu1 %v1054_v26, %s1336_s21  ;;  %v1005_v25 = vrot.slane %v912_v6, %v1768_v41 }
 0x467   :  { %v878_v22 = vsel %vm77_vm0, %v862_v13, 0.0 }
 0x468   :  { %v946_v34 = vadd.f32 %v945_v9, %v944_v21  ;;  %v879_v1 = vadd.f32 %v878_v22, %v877_v24  ;;  %v829_v35 = vpop.permute.xlu1 %828  ;;  %v1012_v40 = vrot.slane %v1005_v25, %v1768_v41 }
 0x469   :  { %v870_v61 = vmul.f32 %v1256_v14, %v829_v35 }
 0x46a   :  { %v947_v16 = vrot.slane %v946_v34, 1  ;;  %v880_v5 = vrot.slane %v879_v1, 4  ;;  %1013 = vrot.lane.b32.xlu0 %v1012_v40, %s1337_s22 }
 0x46b   :  { %v914_v37 = vsel %vm77_vm0, %v870_v61, 0.0  ;;  %vm996_vm0 = vmand %vm994_vm14, %vm995_vm15 }
 0x46c   :  { %v881_v23 = vadd.f32 %v880_v5, %v879_v1  ;;  %v915_v46 = vadd.f32 %v914_v37, %v913_v8  ;;  %v948_v47 = vadd.f32 %v947_v16, %v946_v34 }
 0x46e   :  { %v882_v39 = vrot.slane %v881_v23, 2  ;;  %v916_v53 = vrot.slane %v915_v46, 4  ;;  %v1066_v50 = vrot.slane %v948_v47, %v1768_v41 }
 0x470   :  { %v883_v51 = vadd.f32 %v882_v39, %v881_v23  ;;  %v917_v55 = vadd.f32 %v916_v53, %v915_v46  ;;  %v1073_v52 = vrot.slane %v1066_v50, %v1768_v41 }
 0x472   :  { %v884_v15 = vrot.slane %v883_v51, 1  ;;  %v918_v43 = vrot.slane %v917_v55, 2  ;;  %1074 = vrot.lane.b32.xlu1 %v1073_v52, %s1337_s22 }
 0x474   :  { %v885_v63 = vadd.f32 %v884_v15, %v883_v51  ;;  %v919_v17 = vadd.f32 %v918_v43, %v917_v55 }
 0x476   :  { %v920_v27 = vrot.slane %v919_v17, 1  ;;  %953 = vst.msk [vmem:[#allocation8] sm:$0x1] %vm951_vm10, %v885_v63 }
 0x478   :  { %v921_v4 = vadd.f32 %v920_v27, %v919_v17 }
 0x47a   :  { %1020 = vst.msk [vmem:[#allocation8 + $0x1] sm:$0x1] %vm951_vm10, %v921_v4 }
 0x4c0   :  { %v970_v18 = vpop.permute.xlu0 %969 }
 0x4c1   :  { %975 = vst.msk [vmem:[#allocation8] sm:$0x1] %vm974_vm13, %v970_v18 }
 0x4c8   :  { %v1037_v29 = vpop.permute.xlu1 %1036 }
 0x4c9   :  { %1039 = vst.msk [vmem:[#allocation8 + $0x1] sm:$0x1] %vm974_vm13, %v1037_v29 }
 0x4d0   :  { %v992_v41 = vpop.permute.xlu0 %991 }
 0x4d1   :  { %997 = vst.msk [vmem:[#allocation8] sm:$0x1] %vm996_vm0, %v992_v41 }
 0x4d8   :  { %v1056_v44 = vpop.permute.xlu1 %1055 }
 0x4d9   :  { %1058 = vst.msk [vmem:[#allocation8 + $0x1] sm:$0x1] %vm996_vm0, %v1056_v44 }
 0x4dc   :  { %v1014_v62 = vpop.permute.xlu0 %1013 }
 0x4dd   :  { %1019 = vst.msk [vmem:[#allocation8] sm:$0x1] %vm1018_vm3, %v1014_v62 }
 0x4e4   :  { %v1075_v38 = vpop.permute.xlu1 %1074 }
 0x4e5   :  { %1077 = vst.msk [vmem:[#allocation8 + $0x1] sm:$0x1] %vm1018_vm3, %v1075_v38 }
 0x4e6   :  { %1312 = shalt.err (!%p1309_p6)
}
 0x4e7   :  { %s1313_s28 = scalar_lea.hbm %s1827_s5, 32 }
 0x4e8   :  { %p1314_p7 = scmp.ne.s32.totalorder %s1827_s5, %s1313_s28  ;;  %p1317_p8 = scmp.lt.u32.totalorder %s1313_s28, %s1827_s5 }
 0x4ea   :  { %p1319_p9 = pnand %p1317_p8, %p1314_p7 }
 0x4ec   :  { %1322 = shalt.err (!%p1319_p9)
}
 0x4ed   :  { %1087 = dma.vmem_to_hbm [thread:$0]  %s1085_s24, 32, %s1827_s5, [#allocation5]  }
 0x4ee   :  { %1327 = dma.done.wait [#allocation5], 32  }
 0x4ef   :  { %1328 = vsyncadd [#allocation5], 4294967264 }
 0x4f0   :  { %1091 = vsyncpa [#allocation4], 1 }
 0x4f1   :  { %1092 = vsyncpa [#allocation7], 1 }
 0x4f2   :  { %1093 = vsyncpa [#allocation5], 1 }

</bundles_post_ra>
